<compile_context>
chip_gen: v7x
topology: tpu7x:2x2x1
jax: 0.10.0
libtpu: 0.0.40
codegen_flags: <defaults>
</compile_context>

<pallas_src>
import math

import jax
import jax.numpy as jnp
from jax import lax
from jax.experimental import pallas as pl
from jax.experimental.pallas import tpu as pltpu

_MASK_FILL = -1000000000.0   # same constant as the PyTorch module
_PAD_FILL = -1.0e30          # padded (non-existent) keys: exp underflows to 0 exactly


# ---------------------------------------------------------------------------
# In-kernel helpers
# ---------------------------------------------------------------------------
def _apply_mask(s, mask_ref):
    """Apply the user keep-mask (int8, possibly with broadcast dims) to f32 scores."""
    keep = mask_ref[...]
    if keep.shape != s.shape:
        # Broadcast in 32-bit (best-supported relayout), then compare.
        keep = jnp.broadcast_to(keep.astype(jnp.float32), s.shape) > 0.0
    else:
        keep = keep != 0
    return jnp.where(keep, s, jnp.float32(_MASK_FILL))


def _apply_kv_padding(s, ki, kv_tile, kv_len):
    """Kill scores of padded (non-existent) keys appended to reach a tile multiple."""
    key_idx = ki * kv_tile + lax.broadcasted_iota(jnp.int32, s.shape, dimension=2)
    return jnp.where(key_idx < kv_len, s, jnp.float32(_PAD_FILL))


# ---------------------------------------------------------------------------
# Flash (multi-KV-tile) kernel body: online softmax with f32 VMEM accumulators
# ---------------------------------------------------------------------------
def _flash_body(q_ref, k_ref, v_ref, mask_ref, o_ref, qs_sc, m_sc, l_sc, acc_sc,
                *, scale, kv_len, kv_tile, kv_padded, approx_recip):
    ki = pl.program_id(2)

    @pl.when(ki == 0)
    def _init():
        # 1/sqrt(d_k) folded into q ONCE per (batch, q-tile), not once per KV step.
        qs_sc[...] = q_ref[...] * scale
        m_sc[...] = jnp.full_like(m_sc, -jnp.inf)
        l_sc[...] = jnp.zeros_like(l_sc)
        acc_sc[...] = jnp.zeros_like(acc_sc)

    q = qs_sc[...]                           # (BB, TQ, Dk), input dtype
    k = k_ref[...]                           # (BB, TK, Dk)
    v = v_ref[...]                           # (BB, TK, Dv)

    # Scores: contract last dims (no explicit k.T), f32 accumulation on the MXU.
    s = jnp.einsum("bqd,bkd->bqk", q, k, preferred_element_type=jnp.float32)

    if mask_ref is not None:
        s = _apply_mask(s, mask_ref)
    if kv_padded:
        s = _apply_kv_padding(s, ki, kv_tile, kv_len)

    # Online (streaming) softmax update.
    m_prev = m_sc[...]                                           # (BB, TQ, 1)
    m_new = jnp.maximum(m_prev, jnp.max(s, axis=-1, keepdims=True))
    alpha = jnp.exp(m_prev - m_new)
    p = jnp.exp(s - m_new)
    l_sc[...] = alpha * l_sc[...] + jnp.sum(p, axis=-1, keepdims=True)
    acc_sc[...] = alpha * acc_sc[...] + jnp.einsum(
        "bqk,bkd->bqd", p.astype(v.dtype), v, preferred_element_type=jnp.float32)
    m_sc[...] = m_new

    @pl.when(ki == pl.num_programs(2) - 1)
    def _finalize():
        l = l_sc[...]
        if approx_recip:
            o = acc_sc[...] * pl.reciprocal(l, approx=True)      # EUP vrcp (bf16-grade)
        else:
            o = acc_sc[...] / l                                  # exact for f32 callers
        o_ref[...] = o.astype(o_ref.dtype)


def _make_flash_kernel(scale, has_mask, kv_len, kv_tile, kv_padded, approx_recip):
    if has_mask:
        def kernel(q_ref, k_ref, v_ref, mask_ref, o_ref, qs_sc, m_sc, l_sc, acc_sc):
            _flash_body(q_ref, k_ref, v_ref, mask_ref, o_ref, qs_sc, m_sc, l_sc, acc_sc,
                        scale=scale, kv_len=kv_len, kv_tile=kv_tile,
                        kv_padded=kv_padded, approx_recip=approx_recip)
    else:
        def kernel(q_ref, k_ref, v_ref, o_ref, qs_sc, m_sc, l_sc, acc_sc):
            _flash_body(q_ref, k_ref, v_ref, None, o_ref, qs_sc, m_sc, l_sc, acc_sc,
                        scale=scale, kv_len=kv_len, kv_tile=kv_tile,
                        kv_padded=kv_padded, approx_recip=approx_recip)
    return kernel


# ---------------------------------------------------------------------------
# Single-KV-tile kernel body: plain softmax, no online-softmax overhead
# ---------------------------------------------------------------------------
def _single_body(q_ref, k_ref, v_ref, mask_ref, o_ref, *, scale, approx_recip):
    q = q_ref[...] * scale
    s = jnp.einsum("bqd,bkd->bqk", q, k_ref[...],
                   preferred_element_type=jnp.float32)
    if mask_ref is not None:
        s = _apply_mask(s, mask_ref)
    m = jnp.max(s, axis=-1, keepdims=True)
    p = jnp.exp(s - m)
    l = jnp.sum(p, axis=-1, keepdims=True)
    acc = jnp.einsum("bqk,bkd->bqd", p.astype(v_ref.dtype), v_ref[...],
                     preferred_element_type=jnp.float32)
    if approx_recip:
        o = acc * pl.reciprocal(l, approx=True)
    else:
        o = acc / l
    o_ref[...] = o.astype(o_ref.dtype)


def _make_single_kernel(scale, has_mask, approx_recip):
    if has_mask:
        def kernel(q_ref, k_ref, v_ref, mask_ref, o_ref):
            _single_body(q_ref, k_ref, v_ref, mask_ref, o_ref,
                         scale=scale, approx_recip=approx_recip)
    else:
        def kernel(q_ref, k_ref, v_ref, o_ref):
            _single_body(q_ref, k_ref, v_ref, None, o_ref,
                         scale=scale, approx_recip=approx_recip)
    return kernel


# ---------------------------------------------------------------------------
# Tiling / hardware heuristics
# ---------------------------------------------------------------------------
def _round_up(x, m):
    return ((x + m - 1) // m) * m


def _largest_divisor_tile(full, pref, mult):
    """Largest multiple of `mult` that is <= min(pref, full) and divides `full`."""
    t = (min(pref, full) // mult) * mult
    while t >= mult:
        if full % t == 0:
            return t
        t -= mult
    return None


def _plan_tile(full, pref, mult, pad_mult):
    """Return (tile, padded_full). Prefers no padding; pads to a multiple of
    `pad_mult` when the unpadded factorization would force tiny tiles."""
    if full <= pref:
        return full, full                      # one full block (always legal)
    best_t, best_full = None, None
    t = _largest_divisor_tile(full, pref, mult)
    if t is not None:
        best_t, best_full = t, full
    padded = _round_up(full, pad_mult)
    t2 = _largest_divisor_tile(padded, pref, mult)
    if t2 is not None:
        if best_t is None or (padded // t2) < (best_full // best_t):
            best_t, best_full = t2, padded
    return best_t, best_full


def _pick_batch_block(B, TQ, n_q_tiles, want_two):
    """Fold batches into one block when sequences are short (amortizes ~0.35us
    per grid step), but never collapse both parallel grid axes on multi-TC chips."""
    if TQ >= 128:
        return 1
    target = max(1, 256 // max(TQ, 1))
    max_bb = B
    if want_two and n_q_tiles == 1 and B >= 2:
        max_bb = max(1, B // 2)
    for cand in range(min(max_bb, target), 0, -1):
        if B % cand == 0:
            return cand
    return 1


def _tensorcores_per_chip():
    """2 for chips whose TensorCores share one program (megacore / dual-TC)."""
    try:
        kind = jax.devices()[0].device_kind.lower()
    except Exception:
        return 1
    for tag in ("v4", "v5p", "v7"):
        if tag in kind:
            return 2
    return 1


def _vmem_limit_bytes(BB, TQ, TK, Dk, Dv, itemsize, mask_block_bytes):
    in_bytes = BB * (TQ * Dk + TK * Dk + TK * Dv) * itemsize
    out_bytes = BB * TQ * Dv * itemsize
    scratch = BB * TQ * (Dv + 2) * 4 + BB * TQ * Dk * itemsize
    temps = 4 * BB * TQ * TK * 4              # f32 score/prob temporaries + headroom
    est = 2 * (in_bytes + out_bytes + mask_block_bytes) + scratch + temps
    try:
        phys = int(pltpu.get_tpu_info().vmem_capacity_bytes)
    except Exception:
        phys = 64 * 1024 * 1024               # conservative: v7x per-TC VMEM
    cap = int(phys * 0.6)                     # leave headroom for the compiler
    return int(min(max(4 * est, 16 * 1024 * 1024), cap))


# ---------------------------------------------------------------------------
# Public wrapper
# ---------------------------------------------------------------------------
def scaled_dot_product_attention(q, k, v, mask=None, *, compute_dtype=None):
    """Pallas TPU implementation of ScaledDotProductAttention.forward (eval mode).

    q: (B, Lq, Dk), k: (B, Lk, Dk), v: (B, Lk, Dv); mask broadcastable to
    (B, Lq, Lk), falsy positions filled with -1e9 before softmax.
    `compute_dtype=jnp.bfloat16` optionally runs the matmuls in bf16 for f32
    inputs (flash-attention-grade accuracy, much higher MXU throughput).
    Returns (B, Lq, Dv) in q's original dtype.
    """
    out_dtype = q.dtype
    B, Lq, Dk = q.shape
    Bk, Lk, Dk2 = k.shape
    Bv, Lv, Dv = v.shape
    assert Dk == Dk2 and B == Bk == Bv and Lk == Lv

    if compute_dtype is not None and jnp.dtype(compute_dtype) != jnp.dtype(q.dtype):
        q = q.astype(compute_dtype)
        k = k.astype(compute_dtype)
        v = v.astype(compute_dtype)

    cores = _tensorcores_per_chip()

    # --- tiling plan ---------------------------------------------------------
    TQ, Lq_pad = _plan_tile(Lq, 512, 32, 128)    # big Q tiles => fewer K/V re-reads
    TK, Lk_pad = _plan_tile(Lk, 512, 128, 128)   # TK multiple of 128 (lane dim)
    nQ = Lq_pad // TQ
    nK = Lk_pad // TK
    BB = _pick_batch_block(B, TQ, nQ, want_two=(cores >= 2))
    # Megacore: make sure the two "parallel" axes expose >= 2 programs.
    if cores >= 2 and (B // BB) * nQ < 2:
        t = _largest_divisor_tile(Lq_pad, max(TQ // 2, 32), 32)
        if t is not None and Lq_pad // t >= 2:
            TQ, nQ = t, Lq_pad // t

    # --- padding (awkward sequence lengths) ----------------------------------
    if Lq_pad != Lq:
        q = jnp.pad(q, ((0, 0), (0, Lq_pad - Lq), (0, 0)))
    if Lk_pad != Lk:
        k = jnp.pad(k, ((0, 0), (0, Lk_pad - Lk), (0, 0)))
        v = jnp.pad(v, ((0, 0), (0, Lk_pad - Lk), (0, 0)))

    scale = 1.0 / math.sqrt(Dk)
    approx_recip = jnp.dtype(out_dtype).itemsize < 4
    single_kv = (nK == 1)

    # --- mask: keep natural broadcast shape, int8, no (B, Lq, Lk) blow-up -----
    mask_arg = None
    mask_spec = None
    mask_block_bytes = 0
    if mask is not None:
        m = jnp.asarray(mask)
        if m.ndim > 3:
            assert all(d == 1 for d in m.shape[:-3]), \
                "mask must be broadcastable to (B, Lq, Lk)"
            m = m.reshape(m.shape[-3:])
        while m.ndim < 3:
            m = m[None, ...]
        Bm, Qm, Km = m.shape
        assert Bm in (1, B) and Qm in (1, Lq) and Km in (1, Lk), \
            "mask must be broadcastable to (B, Lq, Lk)"
        m = (m != 0).astype(jnp.int8)            # 1 = keep, 0 = fill with -1e9
        pad_q = (Lq_pad - Lq) if Qm == Lq else 0
        pad_k = (Lk_pad - Lk) if Km == Lk else 0
        if pad_q or pad_k:
            m = jnp.pad(m, ((0, 0), (0, pad_q), (0, pad_k)), constant_values=1)
        mb = BB if Bm == B else 1
        mq = TQ if Qm == Lq else 1
        mk = TK if Km == Lk else 1
        bsel = 1 if Bm == B else 0
        qsel = 1 if Qm == Lq else 0
        ksel = 1 if Km == Lk else 0
        if single_kv:
            mask_spec = pl.BlockSpec(
                (mb, mq, mk),
                lambda b, qi, _b=bsel, _q=qsel: (b * _b, qi * _q, 0))
        else:
            mask_spec = pl.BlockSpec(
                (mb, mq, mk),
                lambda b, qi, ki, _b=bsel, _q=qsel, _k=ksel:
                    (b * _b, qi * _q, ki * _k))
        mask_arg = m
        mask_block_bytes = mb * mq * mk          # int8

    itemsize = jnp.dtype(q.dtype).itemsize
    vmem_limit = _vmem_limit_bytes(BB, TQ, TK, Dk, Dv, itemsize, mask_block_bytes)

    # --- grid / specs / kernel -----------------------------------------------
    if single_kv:
        grid = (B // BB, nQ)
        q_spec = pl.BlockSpec((BB, TQ, Dk), lambda b, qi: (b, qi, 0))
        k_spec = pl.BlockSpec((BB, TK, Dk), lambda b, qi: (b, 0, 0))
        v_spec = pl.BlockSpec((BB, TK, Dv), lambda b, qi: (b, 0, 0))
        o_spec = pl.BlockSpec((BB, TQ, Dv), lambda b, qi: (b, qi, 0))
        scratch_shapes = []
        dims = ("parallel", "parallel")
        kernel = _make_single_kernel(scale, mask_arg is not None, approx_recip)
    else:
        grid = (B // BB, nQ, nK)
        q_spec = pl.BlockSpec((BB, TQ, Dk), lambda b, qi, ki: (b, qi, 0))
        k_spec = pl.BlockSpec((BB, TK, Dk), lambda b, qi, ki: (b, ki, 0))
        v_spec = pl.BlockSpec((BB, TK, Dv), lambda b, qi, ki: (b, ki, 0))
        o_spec = pl.BlockSpec((BB, TQ, Dv), lambda b, qi, ki: (b, qi, 0))
        scratch_shapes = [
            pltpu.VMEM((BB, TQ, Dk), q.dtype),     # q * 1/sqrt(d_k) (hoisted)
            pltpu.VMEM((BB, TQ, 1), jnp.float32),  # running max
            pltpu.VMEM((BB, TQ, 1), jnp.float32),  # running sum
            pltpu.VMEM((BB, TQ, Dv), jnp.float32), # output accumulator
        ]
        dims = ("parallel", "parallel", "arbitrary")
        kernel = _make_flash_kernel(scale, mask_arg is not None,
                                    Lk, TK, Lk_pad != Lk, approx_recip)

    in_specs = [q_spec, k_spec, v_spec]
    args = [q, k, v]
    if mask_arg is not None:
        in_specs.append(mask_spec)
        args.append(mask_arg)

    out = pl.pallas_call(
        kernel,
        out_shape=jax.ShapeDtypeStruct((B, Lq_pad, Dv), out_dtype),
        grid_spec=pltpu.PrefetchScalarGridSpec(
            num_scalar_prefetch=0,
            grid=grid,
            in_specs=in_specs,
            out_specs=o_spec,
            scratch_shapes=scratch_shapes,
        ),
        compiler_params=pltpu.CompilerParams(
            dimension_semantics=dims,
            vmem_limit_bytes=vmem_limit,
        ),
    )(*args)

    if Lq_pad != Lq:
        out = out[:, :Lq, :]
    return out


# ---------------------------------------------------------------------------
# Pure-JAX reference (matches the PyTorch module in eval mode)
# ---------------------------------------------------------------------------
def _reference_sdpa(q, k, v, mask=None):
    d_k = k.shape[-1]
    attn = jnp.einsum("bqd,bkd->bqk", q.astype(jnp.float32), k.astype(jnp.float32))
    attn = attn / math.sqrt(d_k)
    if mask is not None:
        m = jnp.asarray(mask)
        while m.ndim < 3:
            m = m[None, ...]
        attn = jnp.where(jnp.broadcast_to(m != 0, attn.shape),
                         attn, jnp.float32(_MASK_FILL))
    p = jax.nn.softmax(attn, axis=-1)
    return jnp.einsum("bqk,bkd->bqd", p, v.astype(jnp.float32)).astype(q.dtype)


if __name__ == "__main__":
    keys = jax.random.split(jax.random.PRNGKey(0), 12)

    # 1) small f32, full (B, Lq, Lk) mask  -> single-KV-tile (non-flash) kernel
    B, Lq, Lk, Dk, Dv = 2, 8, 8, 32, 32
    q = jax.random.normal(keys[0], (B, Lq, Dk), dtype=jnp.float32)
    k = jax.random.normal(keys[1], (B, Lk, Dk), dtype=jnp.float32)
    v = jax.random.normal(keys[2], (B, Lk, Dv), dtype=jnp.float32)
    mask = jax.random.bernoulli(keys[3], p=0.8, shape=(B, Lq, Lk))   # True = keep
    out = jax.block_until_ready(scaled_dot_product_attention(q, k, v, mask))
    ref = _reference_sdpa(q, k, v, mask)
    assert jnp.allclose(out, ref, atol=2e-3, rtol=2e-3), "masked f32 mismatch"

    # 2) small f32, no mask (mask-free kernel variant)
    out2 = jax.block_until_ready(scaled_dot_product_attention(q, k, v, None))
    ref2 = _reference_sdpa(q, k, v, None)
    assert jnp.allclose(out2, ref2, atol=2e-3, rtol=2e-3), "unmasked f32 mismatch"

    # 3) f32 inputs with opt-in bf16 MXU compute
    out3 = jax.block_until_ready(
        scaled_dot_product_attention(q, k, v, mask, compute_dtype=jnp.bfloat16))
    err3 = jnp.max(jnp.abs(out3 - ref))
    assert err3 < 5e-2, f"bf16-compute mismatch: max abs err = {err3}"

    # 4) bf16, broadcast (B, 1, Lk) mask, flash path (nQ=1, nK=2), TQ=512/TK=512
    B2, Lq2, Lk2, D2 = 2, 512, 1024, 64
    qb = jax.random.normal(keys[4], (B2, Lq2, D2), dtype=jnp.bfloat16)
    kb = jax.random.normal(keys[5], (B2, Lk2, D2), dtype=jnp.bfloat16)
    vb = jax.random.normal(keys[6], (B2, Lk2, D2), dtype=jnp.bfloat16)
    mb = jax.random.bernoulli(keys[7], p=0.9, shape=(B2, 1, Lk2))
    outb = jax.block_until_ready(scaled_dot_product_attention(qb, kb, vb, mb))
    refb = _reference_sdpa(qb, kb, vb, mb)
    errb = jnp.max(jnp.abs(outb.astype(jnp.float32) - refb.astype(jnp.float32)))
    assert errb < 7.5e-2, f"bf16 tiled mismatch: max abs err = {errb}"

    # 5) awkward Lk (not a multiple of 128): exercises KV padding + in-kernel
    #    padded-key masking and a full-size mask padded along K.
    B3, Lq3, Lk3, D3 = 2, 300, 600, 64
    qa = jax.random.normal(keys[8], (B3, Lq3, D3), dtype=jnp.bfloat16)
    ka = jax.random.normal(keys[9], (B3, Lk3, D3), dtype=jnp.bfloat16)
    va = jax.random.normal(keys[10], (B3, Lk3, D3), dtype=jnp.bfloat16)
    ma = jax.random.bernoulli(keys[11], p=0.85, shape=(B3, Lq3, Lk3))
    outa = jax.block_until_ready(scaled_dot_product_attention(qa, ka, va, ma))
    refa = _reference_sdpa(qa, ka, va, ma)
    erra = jnp.max(jnp.abs(outa.astype(jnp.float32) - refa.astype(jnp.float32)))
    assert erra < 7.5e-2, f"bf16 padded mismatch: max abs err = {erra}"

    print("KERNEL_OK")
</pallas_src>

<mosaic_0001>
module attributes {stable_mosaic.version = 11 : i64} {
  func.func @kernel(%arg0: i32, %arg1: i32, %arg2: memref<2x8x32xf32, #tpu.memory_space<vmem>>, %arg3: memref<2x8x32xf32, #tpu.memory_space<vmem>>, %arg4: memref<2x8x32xf32, #tpu.memory_space<vmem>>, %arg5: memref<2x8x8xi8, #tpu.memory_space<vmem>>, %arg6: memref<2x8x32xf32, #tpu.memory_space<vmem>>) attributes {dimension_semantics = [#tpu.dimension_semantics<parallel>, #tpu.dimension_semantics<parallel>], iteration_bounds = array<i64: 1, 1>, scalar_prefetch = 0 : i64, scratch_operands = 0 : i64, tpu.core_type = #tpu.core_type<tc>, window_params = [{transform_indices = @transform_0, window_bounds = array<i64: 2, 8, 32>}, {transform_indices = @transform_1, window_bounds = array<i64: 2, 8, 32>}, {transform_indices = @transform_2, window_bounds = array<i64: 2, 8, 32>}, {transform_indices = @transform_3, window_bounds = array<i64: 2, 8, 8>}, {transform_indices = @transform_4, window_bounds = array<i64: 2, 8, 32>}]} {
    %c0 = arith.constant 0 : index
    %c0_0 = arith.constant 0 : index
    %c0_1 = arith.constant 0 : index
    %0 = vector.load %arg2[%c0, %c0_0, %c0_1] : memref<2x8x32xf32, #tpu.memory_space<vmem>>, vector<2x8x32xf32>
    %cst = arith.constant 0.176776692 : f32
    %1 = vector.broadcast %cst : f32 to vector<2x8x32xf32>
    %2 = arith.mulf %0, %1 : vector<2x8x32xf32>
    %c0_2 = arith.constant 0 : index
    %c0_3 = arith.constant 0 : index
    %c0_4 = arith.constant 0 : index
    %3 = vector.load %arg3[%c0_2, %c0_3, %c0_4] : memref<2x8x32xf32, #tpu.memory_space<vmem>>, vector<2x8x32xf32>
    "tpu.trace_start"() <{level = 10 : i32, message = "bqd,bkd->bqk"}> : () -> ()
    %cst_5 = arith.constant dense<0.000000e+00> : vector<2x8x8xf32>
    %4 = tpu.matmul %2, %3, %cst_5 {dimension_numbers = #tpu.dot_dimension_numbers<[2], [2], [1], [1], [0, 0, 0, 1, 1, 1], [0], [0]>} : vector<2x8x32xf32>, vector<2x8x32xf32>, vector<2x8x8xf32> -> vector<2x8x8xf32>
    "tpu.trace_stop"() : () -> ()
    %c0_6 = arith.constant 0 : index
    %c0_7 = arith.constant 0 : index
    %c0_8 = arith.constant 0 : index
    %5 = vector.load %arg5[%c0_6, %c0_7, %c0_8] : memref<2x8x8xi8, #tpu.memory_space<vmem>>, vector<2x8x8xi8>
    %c0_i8 = arith.constant 0 : i8
    %6 = vector.broadcast %c0_i8 : i8 to vector<2x8x8xi8>
    %7 = arith.cmpi ne, %5, %6 : vector<2x8x8xi8>
    %cst_9 = arith.constant -1.000000e+09 : f32
    %8 = vector.broadcast %cst_9 : f32 to vector<2x8x8xf32>
    %9 = arith.select %7, %4, %8 : vector<2x8x8xi1>, vector<2x8x8xf32>
    %cst_10 = arith.constant dense<0xFF800000> : vector<2x8xf32>
    %10 = vector.multi_reduction <maximumf>, %9, %cst_10 [2] : vector<2x8x8xf32> to vector<2x8xf32>
    %11 = vector.shape_cast %10 : vector<2x8xf32> to vector<2x8x1xf32>
    %12 = vector.broadcast %11 : vector<2x8x1xf32> to vector<2x8x8xf32>
    %13 = arith.subf %9, %12 : vector<2x8x8xf32>
    %14 = math.exp %13 : vector<2x8x8xf32>
    %cst_11 = arith.constant dense<0.000000e+00> : vector<2x8xf32>
    %15 = vector.multi_reduction <add>, %14, %cst_11 [2] : vector<2x8x8xf32> to vector<2x8xf32>
    %16 = vector.shape_cast %15 : vector<2x8xf32> to vector<2x8x1xf32>
    %c0_12 = arith.constant 0 : index
    %c0_13 = arith.constant 0 : index
    %c0_14 = arith.constant 0 : index
    %17 = vector.load %arg4[%c0_12, %c0_13, %c0_14] : memref<2x8x32xf32, #tpu.memory_space<vmem>>, vector<2x8x32xf32>
    "tpu.trace_start"() <{level = 10 : i32, message = "bqk,bkd->bqd"}> : () -> ()
    %cst_15 = arith.constant dense<0.000000e+00> : vector<2x8x32xf32>
    %18 = tpu.matmul %14, %17, %cst_15 {dimension_numbers = #tpu.dot_dimension_numbers<[2], [1], [1], [2], [0, 0, 0, 1, 1, 2], [0], [0]>} : vector<2x8x8xf32>, vector<2x8x32xf32>, vector<2x8x32xf32> -> vector<2x8x32xf32>
    "tpu.trace_stop"() : () -> ()
    %19 = vector.broadcast %16 : vector<2x8x1xf32> to vector<2x8x32xf32>
    %20 = arith.divf %18, %19 : vector<2x8x32xf32>
    %c0_16 = arith.constant 0 : index
    %c0_17 = arith.constant 0 : index
    %c0_18 = arith.constant 0 : index
    %21 = vector.load %arg6[%c0_16, %c0_17, %c0_18] : memref<2x8x32xf32, #tpu.memory_space<vmem>>, vector<2x8x32xf32>
    tpu.vector_store %arg6[%c0_16, %c0_17, %c0_18], %20 {strides = array<i32>} : memref<2x8x32xf32, #tpu.memory_space<vmem>>, vector<2x8x32xf32>,
    return
  }
  func.func @transform_0(%arg0: i32, %arg1: i32) -> (i32, i32, i32) {
    %c0_i32 = arith.constant 0 : i32
    %c0_i32_0 = arith.constant 0 : i32
    return %arg0, %arg1, %c0_i32 : i32, i32, i32
  }
  func.func @transform_1(%arg0: i32, %arg1: i32) -> (i32, i32, i32) {
    %c0_i32 = arith.constant 0 : i32
    %c0_i32_0 = arith.constant 0 : i32
    %c0_i32_1 = arith.constant 0 : i32
    return %arg0, %c0_i32, %c0_i32_0 : i32, i32, i32
  }
  func.func @transform_2(%arg0: i32, %arg1: i32) -> (i32, i32, i32) {
    %c0_i32 = arith.constant 0 : i32
    %c0_i32_0 = arith.constant 0 : i32
    %c0_i32_1 = arith.constant 0 : i32
    return %arg0, %c0_i32, %c0_i32_0 : i32, i32, i32
  }
  func.func @transform_3(%arg0: i32, %arg1: i32) -> (i32, i32, i32) {
    %c1_i32 = arith.constant 1 : i32
    %0 = arith.muli %arg0, %c1_i32 : i32
    %c1_i32_0 = arith.constant 1 : i32
    %1 = arith.muli %arg1, %c1_i32_0 : i32
    %c0_i32 = arith.constant 0 : i32
    %c0_i32_1 = arith.constant 0 : i32
    return %0, %1, %c0_i32 : i32, i32, i32
  }
  func.func @transform_4(%arg0: i32, %arg1: i32) -> (i32, i32, i32) {
    %c0_i32 = arith.constant 0 : i32
    %c0_i32_0 = arith.constant 0 : i32
    return %arg0, %arg1, %c0_i32 : i32, i32, i32
  }
}

</mosaic_0001>

<bundles_post_ra>
// kernel: tpu_custom_call.1
= control target key start
LH: loop header
LB: loop body
LE: loop exit
PB: predicated region body
PF: predicated region fallthrough
CT: control target
= control target key end

     0   :  { %9 = vsyncpa [#allocation3], 0  ;;  %s691_s0 = inlined_call_operand.hbm [shape: f32[2,8,32], index: 0, kind: input, shape index: {}]   ;;  %s692_s1 = inlined_call_operand.hbm [shape: f32[2,8,32], index: 1, kind: input, shape index: {}]   ;;  %s693_s2 = inlined_call_operand.hbm [shape: f32[2,8,32], index: 2, kind: input, shape index: {}]   ;;  %s694_s3 = inlined_call_operand.vmem [shape: s8[2,8,8], index: 3, kind: input, shape index: {}]   ;;  %s695_s4 = inlined_call_operand.hbm [shape: f32[2,8,32], index: 4, kind: output, shape index: {}]  }
   0x1   :  { %10 = vsyncpa [#allocation6], 0 }
   0x2   :  { %11 = vsyncpa [#allocation4], 0  ;;  %s568_s15 = smov [#allocation5]   ;;  %s569_s17 = smov [#allocation2]  }
   0x3   :  { %s29_s16 = sshll.u32 %s568_s15, 4  ;;  %s17_s18 = sshll.u32 %s569_s17, 4  ;;  %s30_s16 = int_to_ptr.vmem [resolvable:$true] %s29_s16  ;;  %s602_s18 = int_to_ptr.vmem [resolvable:$true] %s17_s18 }
   0x4   :  { %s474_s21 = scalar_lea.hbm %s692_s1, 256 }
   0x5   :  { %p475_p0 = scmp.ne.s32.totalorder %s692_s1, %s474_s21  ;;  %p478_p1 = scmp.lt.u32.totalorder %s474_s21, %s692_s1 }
   0x7   :  { %p480_p2 = pnand %p478_p1, %p475_p0 }
   0x9   :  { %483 = shalt.err (!%p480_p2)
}
   0xa   :  { %s484_s26 = scalar_lea.vmem %s30_s16, 256  ;;  %p489_p4 = scmp.lt.s32.totalorder %s30_s16, %s30_s16 }
   0xb   :  { %p485_p3 = scmp.ne.s32.totalorder %s30_s16, %s484_s26  ;;  %p490_p5 = scmp.lt.s32.totalorder %s484_s26, %s484_s26 }
   0xd   :  { %p491_p6 = por %p490_p5, %p489_p4 }
   0xf   :  { %p492_p7 = pnand %p491_p6, %p485_p3 }
  0x11   :  { %495 = shalt.err (!%p492_p7)
}
  0x12   :  { %s570_s27 = smov 128   ;;  %s571_s28 = smov 8  }
  0x13   :  { %35 = dma.hbm_to_vmem [thread:$0]  %s692_s1, 256, %s30_s16, [#allocation6], %s570_s27, %s570_s27, %s571_s28  }
  0x14   :  { %s496_s7 = scalar_lea.hbm %s691_s0, 256 }
  0x15   :  { %p497_p8 = scmp.ne.s32.totalorder %s691_s0, %s496_s7  ;;  %p500_p9 = scmp.lt.u32.totalorder %s496_s7, %s691_s0 }
  0x17   :  { %p502_p10 = pnand %p500_p9, %p497_p8 }
  0x19   :  { %505 = shalt.err (!%p502_p10)
}
  0x1a   :  { %s506_s12 = scalar_lea.vmem %s602_s18, 256  ;;  %p511_p12 = scmp.lt.s32.totalorder %s602_s18, %s602_s18 }
  0x1b   :  { %p507_p11 = scmp.ne.s32.totalorder %s602_s18, %s506_s12  ;;  %p512_p13 = scmp.lt.s32.totalorder %s506_s12, %s506_s12 }
  0x1d   :  { %p513_p0 = por %p512_p13, %p511_p12 }
  0x1f   :  { %p514_p1 = pnand %p513_p0, %p507_p11 }
  0x21   :  { %517 = shalt.err (!%p514_p1)
}
  0x22   :  { %23 = dma.hbm_to_vmem [thread:$0]  %s691_s0, 256, %s602_s18, [#allocation3], %s570_s27, %s570_s27, %s571_s28  }
  0x23   :  { %s572_s14 = smov [#allocation7]   ;;  %s518_s19 = scalar_lea.hbm %s693_s2, 256 }
  0x24   :  { %s41_s15 = sshll.u32 %s572_s14, 4  ;;  %p519_p2 = scmp.ne.s32.totalorder %s693_s2, %s518_s19  ;;  %s42_s15 = int_to_ptr.vmem [resolvable:$true] %s41_s15 }
  0x25   :  { %p522_p3 = scmp.lt.u32.totalorder %s518_s19, %s693_s2 }
  0x27   :  { %p524_p4 = pnand %p522_p3, %p519_p2 }
  0x29   :  { %527 = shalt.err (!%p524_p4)
}
  0x2a   :  { %s528_s24 = scalar_lea.vmem %s42_s15, 256  ;;  %p533_p6 = scmp.lt.s32.totalorder %s42_s15, %s42_s15 }
  0x2b   :  { %p529_p5 = scmp.ne.s32.totalorder %s42_s15, %s528_s24  ;;  %p534_p7 = scmp.lt.s32.totalorder %s528_s24, %s528_s24 }
  0x2d   :  { %p535_p8 = por %p534_p7, %p533_p6 }
  0x2f   :  { %p536_p9 = pnand %p535_p8, %p529_p5 }
  0x31   :  { %539 = shalt.err (!%p536_p9)
}
  0x32   :  { %47 = dma.hbm_to_vmem [thread:$0]  %s693_s2, 256, %s42_s15, [#allocation6], %s570_s27, %s570_s27, %s571_s28  }
  0x33   :  { %562 = dma.done.wait [#allocation3], 256  }
  0x34   :  { %563 = vsyncadd [#allocation3], 4294967040 }
  0x35   :  { %564 = dma.done.wait [#allocation6], 512  }
  0x36   :  { %565 = vsyncadd [#allocation6], 4294966784  ;;  %v573_v0 = vmov 0.0   ;;  %vm574_vm0 = vmmov 0   ;;  %vm67_vm1 = vcmask 261120   ;;  %v65_v1 = vld [vmem:[#allocation5] sm:$0xff] }
  0x37   :  { %437 = vmatprep.subr.mxu0 %v573_v0  ;;  %439 = vmatprep.mubr.msk.f32.mxu0 %vm574_vm0, %v573_v0  ;;  %v61_v2 = vld [vmem:[#allocation2] sm:$0xff]  ;;  %v66_v3 = vld [vmem:[#allocation5 + $0x8] sm:$0xff]  ;;  %v62_v5 = vld [vmem:[#allocation2 + $0x8] sm:$0xff]  ;;  %v575_v9 = vmov 0   ;;  %vm232_vm6 = vcmask 64512  }
  0x38   :  { %442 = vmatprep.subr.mxu1 %v573_v0  ;;  %444 = vmatprep.mubr.msk.f32.mxu1 %vm574_vm0, %v573_v0  ;;  %v63_v4 = vmul.f32 0.17677669, %v61_v2  ;;  %v64_v6 = vmul.f32 0.17677669, %v62_v5  ;;  %v220_v7 = vld [vmem:[%s694_s3] sm:$0x3] }
  0x39   :  { %438 = vmatpush3.xpose.msk.msra.mxu0 %vm67_vm1, %v65_v1  ;;  %443 = vmatpush3.xpose.msk.msra.mxu1 %vm67_vm1, %v66_v3  ;;  %v221_v8 = vld [vmem:[%s694_s3 + $0x2] sm:$0x3]  ;;  %vm222_vm2 = vnez %v220_v7  ;;  %v252_v23 = vld [vmem:[#allocation7 + $0x8] sm:$0xff]  ;;  %s576_s3 = smov [#allocation8]  }
  0x3a   :  { %447 = vmatprep.subr.mxu0 %v573_v0  ;;  %452 = vmatprep.subr.mxu1 %v573_v0  ;;  %vm223_vm3 = vnez %v221_v8  ;;  %v224_v10 = vsel %vm222_vm2, 16843009, %v575_v9  ;;  %v251_v22 = vld [vmem:[#allocation7] sm:$0xff]  ;;  %s410_s30 = sshll.u32 %s576_s3, 4  ;;  %s411_s30 = int_to_ptr.vmem [resolvable:$true] %s410_s30 }
  0x3b   :  { %v225_v11 = vsel %vm223_vm3, 16843009, %v575_v9  ;;  %v226_v12 = vunpack.c.0.s8 %v224_v10  ;;  %s540_s5 = scalar_lea.vmem %s411_s30, 256  ;;  %p545_p11 = scmp.lt.s32.totalorder %s411_s30, %s411_s30 }
  0x3c   :  { %440 = vmatmul.mubr.msk.f32.vlgmr.msra.gmra.mrb[0].mxu0 %vm67_vm1, %v63_v4  ;;  %445 = vmatmul.mubr.msk.f32.vlgmr.msra.gmra.mrb[0].mxu1 %vm67_vm1, %v64_v6  ;;  %v227_v13 = vunpack.c.0.s8 %v225_v11  ;;  %p541_p10 = scmp.ne.s32.totalorder %s411_s30, %s540_s5  ;;  %p546_p12 = scmp.lt.s32.totalorder %s540_s5, %s540_s5 }
  0x3d   :  { %449 = vmatprep.mubr.msk.f32.mxu0 %vm574_vm0, %v573_v0  ;;  %454 = vmatprep.mubr.msk.f32.mxu1 %vm574_vm0, %v573_v0  ;;  %vm228_vm4 = vcmp.ne.s32.totalorder %v226_v12, 0 }
  0x3e   :  { %vm229_vm5 = vcmp.ne.s32.totalorder %v227_v13, 0  ;;  %448 = vmatpush3.msra.mxu0 %v251_v22  ;;  %453 = vmatpush3.msra.mxu1 %v252_v23  ;;  %p547_p13 = por %p546_p12, %p545_p11 }
  0x40   :  { %p548_p0 = pnand %p547_p13, %p541_p10 }
 0x10f   :  { %v140_v14 = vpop.f32.mrb[0].mxu0  ;;  %v216_v15 = vpop.f32.mrb[0].mxu1 }
 0x110   :  { %v230_v16 = vsel %vm228_vm4, %v140_v14, -1e+09  ;;  %v441_v17 = vpop.f32.mrb[1].mxu0  ;;  %v231_v18 = vsel %vm229_vm5, %v216_v15, -1e+09  ;;  %v446_v19 = vpop.f32.mrb[1].mxu1 }
 0x111   :  { %v233_v20 = vsel %vm232_vm6, %v230_v16, -inf  ;;  %v236_v21 = vsel %vm232_vm6, %v231_v18, -inf }
 0x112   :  { %234 = vmax.xlane.f32.xlu0 %v233_v20 }
 0x116   :  { %237 = vmax.xlane.f32.xlu0 %v236_v21 }
 0x19f   :  { %v235_v24 = vpop.xlane.xlu0 %234 }
 0x1a0   :  { %v239_v25 = vsub.f32 %v230_v16, %v235_v24 }
 0x1a2   :  { %v241_v26 = vmul.f32 1.442695, %v239_v25 }
 0x1a3   :  { %v238_v27 = vpop.xlane.xlu0 %237 }
 0x1a4   :  { %466 = vpow2.f32 %v241_v26  ;;  %v240_v28 = vsub.f32 %v231_v18, %v238_v27 }
 0x1a6   :  { %v243_v29 = vmul.f32 1.442695, %v240_v28 }
 0x1a8   :  { %468 = vpow2.f32 %v243_v29 }
 0x1ae   :  { %v467_v30 = vpop.eup %466 }
 0x1af   :  { %450 = vmatmul.mubr.msk.f32.vlgmr.msra.gmra.mrb[2].mxu0 %vm232_vm6, %v467_v30  ;;  %v245_v31 = vsel %vm232_vm6, %v467_v30, 0.0 }
 0x1b0   :  { %246 = vadd.xlane.f32.xlu1 %v245_v31 }
 0x1b2   :  { %v469_v32 = vpop.eup %468 }
 0x1b3   :  { %455 = vmatmul.mubr.msk.f32.vlgmr.msra.gmra.mrb[2].mxu1 %vm232_vm6, %v469_v32  ;;  %v248_v33 = vsel %vm232_vm6, %v469_v32, 0.0 }
 0x1b4   :  { %249 = vadd.xlane.f32.xlu1 %v248_v33 }
 0x23d   :  { %v247_v34 = vpop.xlane.xlu1 %246 }
 0x23e   :  { %470 = vrcp.f32 %v247_v34 }
 0x241   :  { %v250_v35 = vpop.xlane.xlu1 %249 }
 0x242   :  { %472 = vrcp.f32 %v250_v35 }
 0x248   :  { %v471_v36 = vpop.eup %470 }
 0x24c   :  { %v473_v40 = vpop.eup %472 }
 0x282   :  { %v322_v37 = vpop.f32.mrb[2].mxu0 }
 0x283   :  { %v400_v38 = vmul.f32 %v471_v36, %v322_v37  ;;  %v451_v39 = vpop.f32.mrb[3].mxu0 }
 0x285   :  { %403 = vst.msk [vmem:[#allocation8] sm:$0xff] %vm67_vm1, %v400_v38 }
 0x286   :  { %v395_v41 = vpop.f32.mrb[2].mxu1 }
 0x287   :  { %v402_v42 = vmul.f32 %v473_v40, %v395_v41  ;;  %v456_v43 = vpop.f32.mrb[3].mxu1 }
 0x289   :  { %404 = vst.msk [vmem:[#allocation8 + $0x8] sm:$0xff] %vm67_vm1, %v402_v42 }
 0x28a   :  { %551 = shalt.err (!%p548_p0)
}
 0x28b   :  { %s552_s8 = scalar_lea.hbm %s695_s4, 256 }
 0x28c   :  { %p553_p1 = scmp.ne.s32.totalorder %s695_s4, %s552_s8  ;;  %p556_p2 = scmp.lt.u32.totalorder %s552_s8, %s695_s4 }
 0x28e   :  { %p558_p3 = pnand %p556_p2, %p553_p1 }
 0x290   :  { %561 = shalt.err (!%p558_p3)
}
 0x291   :  { %416 = dma.vmem_to_hbm [thread:$0]  %s411_s30, 256, %s695_s4, [#allocation4], %s570_s27, %s570_s27, %s571_s28  }
 0x292   :  { %566 = dma.done.wait [#allocation4], 256  }
 0x293   :  { %567 = vsyncadd [#allocation4], 4294967040 }
 0x294   :  { %420 = vsyncpa [#allocation3], 1 }
 0x295   :  { %421 = vsyncpa [#allocation6], 1 }
 0x296   :  { %422 = vsyncpa [#allocation4], 1 }

</bundles_post_ra>
